<compile_context>
chip_gen: v7x
topology: tpu7x:2x2x1
jax: 0.10.0
libtpu: 0.0.40
codegen_flags: <defaults>
</compile_context>

<pallas_src>
import functools

import numpy as np
import jax
import jax.numpy as jnp
from jax.experimental import pallas as pl
from jax.experimental.pallas import tpu as pltpu

# Small stand-ins for the module constants (production: x = y = 800, inner = 256).
X = 64
Y = 64
INNER = 32
EPS = 1e-5

_VMEM_LIMIT_CACHE = None


def _vmem_limit():
    """min(64 MiB, 3/4 of physical VMEM) -- leaves headroom on v7x (64 MiB/TC)."""
    global _VMEM_LIMIT_CACHE
    if _VMEM_LIMIT_CACHE is None:
        cap = 128 * 1024 * 1024
        try:
            cap = int(pltpu.get_tpu_info().vmem_capacity_bytes)
        except Exception:
            pass
        _VMEM_LIMIT_CACHE = min(64 * 1024 * 1024, (cap * 3) // 4)
    return _VMEM_LIMIT_CACHE


# ----------------------------------------------------------------------------
# 3x3 conv (stride 1, pad 1, no bias) + fused BatchNorm statistics
# ----------------------------------------------------------------------------
def _conv3x3_kernel(x_hbm, ids_ref, w_ref, y_ref, s_ref, ss_ref,
                    xbuf, sem, acc_ref, *, th, wp, mm, slab, h_out):
    # x_hbm : (N, (Hp+3)*(W+2), Cin) bf16 in HBM (rows flattened, zero padded)
    # ids   : (MM, 1) int32  row-id per flat position (junk columns -> huge id)
    # w     : (3, 3, Cin, Cout) bf16
    # y     : (1, MM, Cout) bf16 block (flat rows hh*(W+2)+ww of this row block)
    # s/ss  : (1, 1, Cout) f32 resident per-image channel sum / sum of squares
    # xbuf  : (2, SLAB, Cin) bf16 double-buffered halo slab
    # acc   : (MM, Cout) f32 accumulator scratch
    n = pl.program_id(0)
    r = pl.program_id(1)
    nrb = pl.num_programs(1)

    def slab_copy(rr, slot):
        return pltpu.make_async_copy(
            x_hbm.at[n, pl.ds(rr * th * wp, slab)], xbuf.at[slot], sem.at[slot])

    # Prime the pipeline at the first row block of each image.
    @pl.when(r == 0)
    def _():
        slab_copy(0, 0).start()

    slot = r % 2
    slab_copy(r, slot).wait()

    # Prefetch the next halo slab while computing on the current one.
    @pl.when(r + 1 < nrb)
    def _():
        slab_copy(r + 1, 1 - slot).start()

    # 3x3 conv as 9 flattened matmuls over shifted windows of the slab.
    first = True
    for dy in range(3):
        for dx in range(3):
            tap = xbuf[slot, pl.ds(dy * wp + dx, mm), :]          # (MM, Cin) bf16
            contrib = jnp.dot(tap, w_ref[dy, dx],
                              preferred_element_type=jnp.float32)
            if first:
                acc_ref[...] = contrib
                first = False
            else:
                acc_ref[...] += contrib

    acc = acc_ref[...]
    y_ref[0] = acc.astype(y_ref.dtype)

    # Fused BN statistics: accumulate across row blocks, exclude junk columns
    # and tail rows (row id >= H).
    @pl.when(r == 0)
    def _():
        s_ref[...] = jnp.zeros_like(s_ref)
        ss_ref[...] = jnp.zeros_like(ss_ref)

    valid = (ids_ref[...] + r * th) < h_out                        # (MM, 1) bool
    masked = jnp.where(valid, acc, 0.0)
    s_ref[0] += jnp.sum(masked, axis=0, keepdims=True)
    ss_ref[0] += jnp.sum(masked * masked, axis=0, keepdims=True)


def conv3x3(x, w, th, rb):
    """Returns (y_flat, sum, sumsq).

    y_flat : (N, rb*th*(W+2), Cout) bf16; flat row hh*(W+2)+ww.  Columns >= W
             and rows >= H are junk and are sliced off by bn_relu_slice.
    """
    N, H, W, Cin = x.shape
    Cout = w.shape[-1]
    WP = W + 2
    Hp = rb * th
    MM = th * WP
    SLAB = (th + 2) * WP + 2

    xb = x.astype(jnp.bfloat16)
    xp = jnp.pad(xb, ((0, 0), (1, Hp - H + 2), (1, 1), (0, 0)))
    xp = xp.reshape(N, (Hp + 3) * WP, Cin)                 # free (contiguous)
    wb = w.astype(jnp.bfloat16)

    hh = np.repeat(np.arange(th), WP)
    col = np.tile(np.arange(WP), th)
    ids = np.where(col < W, hh, 1 << 20).astype(np.int32).reshape(MM, 1)

    kernel = functools.partial(_conv3x3_kernel, th=th, wp=WP, mm=MM,
                               slab=SLAB, h_out=H)
    return pl.pallas_call(
        kernel,
        out_shape=[jax.ShapeDtypeStruct((N, Hp * WP, Cout), jnp.bfloat16),
                   jax.ShapeDtypeStruct((N, 1, Cout), jnp.float32),
                   jax.ShapeDtypeStruct((N, 1, Cout), jnp.float32)],
        grid=(N, rb),
        in_specs=[pl.BlockSpec(memory_space=pl.ANY),
                  pl.BlockSpec((MM, 1), lambda n, r: (0, 0)),
                  pl.BlockSpec((3, 3, Cin, Cout), lambda n, r: (0, 0, 0, 0))],
        out_specs=[pl.BlockSpec((1, MM, Cout), lambda n, r: (n, r, 0)),
                   pl.BlockSpec((1, 1, Cout), lambda n, r: (n, 0, 0)),
                   pl.BlockSpec((1, 1, Cout), lambda n, r: (n, 0, 0))],
        scratch_shapes=[pltpu.VMEM((2, SLAB, Cin), jnp.bfloat16),
                        pltpu.SemaphoreType.DMA((2,)),
                        pltpu.VMEM((MM, Cout), jnp.float32)],
        compiler_params=pltpu.CompilerParams(
            dimension_semantics=("parallel", "arbitrary"),
            vmem_limit_bytes=_vmem_limit()),
    )(xp, jnp.asarray(ids), wb)


# ----------------------------------------------------------------------------
# BatchNorm (batch stats) affine + ReLU, fused with junk-column compaction
# ----------------------------------------------------------------------------
def _bn_relu_slice_kernel(x_ref, scale_ref, shift_ref, o_ref, *, w_out):
    # x: (1, TH, W+2, C) bf16 flat conv output; o: (1, TH, W, C) bf16
    xb = x_ref[0, :, :w_out, :].astype(jnp.float32)
    y = jnp.maximum(xb * scale_ref[...] + shift_ref[...], 0.0)
    o_ref[0] = y.astype(o_ref.dtype)


def bn_relu_slice(y_flat, scale, shift, H, W, th, rb):
    N = y_flat.shape[0]
    C = y_flat.shape[-1]
    WP = W + 2
    x4 = y_flat.reshape(N, rb * th, WP, C)                 # free (contiguous)
    kernel = functools.partial(_bn_relu_slice_kernel, w_out=W)
    return pl.pallas_call(
        kernel,
        out_shape=jax.ShapeDtypeStruct((N, H, W, C), jnp.bfloat16),
        grid=(N, rb),
        in_specs=[pl.BlockSpec((1, th, WP, C), lambda n, r: (n, r, 0, 0)),
                  pl.BlockSpec((1, C), lambda n, r: (0, 0)),
                  pl.BlockSpec((1, C), lambda n, r: (0, 0))],
        out_specs=pl.BlockSpec((1, th, W, C), lambda n, r: (n, r, 0, 0)),
        compiler_params=pltpu.CompilerParams(
            dimension_semantics=("parallel", "parallel")),
    )(x4, scale, shift)


def conv_block(x, p):
    """conv(nin, nout): Conv2d(3x3, pad=1, no bias) -> BatchNorm2d -> ReLU."""
    N, H, W, _ = x.shape
    th = min(8, H)
    rb = pl.cdiv(H, th)
    y_flat, blk_sum, blk_ssq = conv3x3(x, p["w"], th, rb)
    # Training-mode BatchNorm (biased batch stats) from the in-kernel f32 sums.
    # NOTE: E[x^2]-E[x]^2 in f32; guarded with max(.,0).
    cnt = float(N * H * W)
    mean = jnp.sum(blk_sum, axis=(0, 1)) / cnt
    var = jnp.maximum(jnp.sum(blk_ssq, axis=(0, 1)) / cnt - mean * mean, 0.0)
    scale = p["gamma"] * jax.lax.rsqrt(var + EPS)
    shift = p["beta"] - mean * scale
    return bn_relu_slice(y_flat, scale.reshape(1, -1), shift.reshape(1, -1),
                         H, W, th, rb)


# ----------------------------------------------------------------------------
# 1x1 conv over a *virtual* channel concat: sum of dots, M-tiled grid
# ----------------------------------------------------------------------------
def conv1x1_multi(xs, ws):
    N, H, W, _ = xs[0].shape
    Cout = ws[0].shape[-1]
    M = N * H * W
    TM = M if M <= 4096 else 4096
    xs2 = [x.astype(jnp.bfloat16).reshape(M, x.shape[-1]) for x in xs]
    wsb = [w.astype(jnp.bfloat16) for w in ws]
    k = len(xs2)

    def kernel(*refs):
        x_refs = refs[:k]
        w_refs = refs[k:2 * k]
        o_ref = refs[2 * k]
        acc = jnp.dot(x_refs[0][...], w_refs[0][...],
                      preferred_element_type=jnp.float32)
        for xr, wr in zip(x_refs[1:], w_refs[1:]):
            acc = acc + jnp.dot(xr[...], wr[...],
                                preferred_element_type=jnp.float32)
        o_ref[...] = acc

    in_specs = ([pl.BlockSpec((TM, x.shape[-1]), lambda i: (i, 0)) for x in xs2] +
                [pl.BlockSpec(w.shape, lambda i: (0, 0)) for w in wsb])
    y = pl.pallas_call(
        kernel,
        out_shape=jax.ShapeDtypeStruct((M, Cout), jnp.float32),
        grid=(pl.cdiv(M, TM),),
        in_specs=in_specs,
        out_specs=pl.BlockSpec((TM, Cout), lambda i: (i, 0)),
        compiler_params=pltpu.CompilerParams(
            dimension_semantics=("parallel",),
            vmem_limit_bytes=_vmem_limit()),
    )(*xs2, *wsb)
    return y.reshape(N, H, W, Cout)


def conv1x1_cat(xs, w):
    """1x1 conv of concat(xs, axis=-1) without materializing the concat."""
    sizes = [x.shape[-1] for x in xs]
    offs = np.cumsum([0] + sizes)
    ws = [w[int(offs[i]):int(offs[i + 1])] for i in range(len(xs))]
    return conv1x1_multi(xs, ws)


# ----------------------------------------------------------------------------
# Separable resize: bilinear upsample (align_corners=False) / adaptive avg pool
# ----------------------------------------------------------------------------
def _pool_matrix(out_size, in_size):
    A = np.zeros((out_size, in_size), np.float32)
    for i in range(out_size):
        s = (i * in_size) // out_size
        e = -((-(i + 1) * in_size) // out_size)           # ceil((i+1)*in/out)
        A[i, s:e] = 1.0 / (e - s)
    return A


def _bilinear_matrix(out_size, in_size):
    A = np.zeros((out_size, in_size), np.float32)
    scale = in_size / out_size
    for i in range(out_size):
        src = max(scale * (i + 0.5) - 0.5, 0.0)
        i0 = min(int(np.floor(src)), in_size - 1)
        i1 = min(i0 + 1, in_size - 1)
        w1 = src - i0
        A[i, i0] += 1.0 - w1
        A[i, i1] += w1
    return A


_AXIS_MAT_CACHE = {}


def _axis_matrix(out_size, in_size, mode):
    key = (out_size, in_size, mode)
    if key not in _AXIS_MAT_CACHE:
        fn = _bilinear_matrix if mode == "up" else _pool_matrix
        _AXIS_MAT_CACHE[key] = jnp.asarray(fn(out_size, in_size),
                                           dtype=jnp.bfloat16)
    return _AXIS_MAT_CACHE[key]


def _hpass_kernel(m_ref, x_ref, o_ref):
    # m: (Ho, H); x: (1, H, TF); o: (1, Ho, TF)
    o_ref[0] = jnp.dot(m_ref[...], x_ref[0],
                       preferred_element_type=jnp.float32).astype(o_ref.dtype)


def _wpass_kernel(m_ref, x_ref, o_ref, *, rows):
    # m: (Wo, W); x: (1, TR, W, C); o: (1, TR, Wo, C) -- per-row W contraction,
    # C stays on lanes, no HBM transposes.
    for t in range(rows):
        o_ref[0, t] = jnp.dot(m_ref[...], x_ref[0, t],
                              preferred_element_type=jnp.float32
                              ).astype(o_ref.dtype)


def resize(x, out_hw, mode):
    """Separable two-pass resize. mode: 'up' (bilinear) or 'pool' (adaptive avg)."""
    N, H, W, C = x.shape
    Ho, Wo = out_hw
    x = x.astype(jnp.bfloat16)
    if Ho != H:                                            # H pass
        Ah = _axis_matrix(Ho, H, mode)
        F = W * C
        TF = F if F <= 8192 else 8192
        y = pl.pallas_call(
            _hpass_kernel,
            out_shape=jax.ShapeDtypeStruct((N, Ho, F), jnp.bfloat16),
            grid=(N, pl.cdiv(F, TF)),
            in_specs=[pl.BlockSpec((Ho, H), lambda n, f: (0, 0)),
                      pl.BlockSpec((1, H, TF), lambda n, f: (n, 0, f))],
            out_specs=pl.BlockSpec((1, Ho, TF), lambda n, f: (n, 0, f)),
            compiler_params=pltpu.CompilerParams(
                dimension_semantics=("parallel", "parallel")),
        )(Ah, x.reshape(N, H, F))
        x = y.reshape(N, Ho, W, C)
        H = Ho
    if Wo != W:                                            # W pass
        Aw = _axis_matrix(Wo, W, mode)
        TR = min(8, H)
        kernel = functools.partial(_wpass_kernel, rows=TR)
        x = pl.pallas_call(
            kernel,
            out_shape=jax.ShapeDtypeStruct((N, H, Wo, C), jnp.bfloat16),
            grid=(N, pl.cdiv(H, TR)),
            in_specs=[pl.BlockSpec((Wo, W), lambda n, r: (0, 0)),
                      pl.BlockSpec((1, TR, W, C), lambda n, r: (n, r, 0, 0))],
            out_specs=pl.BlockSpec((1, TR, Wo, C), lambda n, r: (n, r, 0, 0)),
            compiler_params=pltpu.CompilerParams(
                dimension_semantics=("parallel", "parallel")),
        )(Aw, x)
    return x


# ----------------------------------------------------------------------------
# Parameters and module forward
# ----------------------------------------------------------------------------
def init_params(key, C=INNER):
    def conv_block_params(k, cin, cout):
        std = float(np.sqrt(2.0 / (cin * 9)))              # kaiming_normal_ (fan_in)
        w = jax.random.normal(k, (3, 3, cin, cout), jnp.float32) * std
        return {"w": w,
                "gamma": jnp.ones((cout,), jnp.float32),
                "beta": jnp.full((cout,), 1e-4, jnp.float32)}

    def pw_params(k, cin, cout):
        bound = float(1.0 / np.sqrt(cin))                  # default Conv2d init range
        return jax.random.uniform(k, (cin, cout), jnp.float32, -bound, bound)

    ks = jax.random.split(key, 11)
    return {
        "L1": conv_block_params(ks[0], 2 * C, C),
        "L2": conv_block_params(ks[1], 3 * C, C),
        "L3": conv_block_params(ks[2], 3 * C, C),
        "L4": conv_block_params(ks[3], 2 * C, C),
        "E1": conv_block_params(ks[4], 3 * C, C),
        "E2": conv_block_params(ks[5], 3 * C, C),
        "E3": conv_block_params(ks[6], 3 * C, C),
        "F1": pw_params(ks[7], 2 * C, C),
        "F2": pw_params(ks[8], 3 * C, C),
        "F3": pw_params(ks[9], 3 * C, C),
        "F4": pw_params(ks[10], 2 * C, C),
    }


def fpn_layer_forward(features_nchw, params):
    # NCHW -> NHWC, bf16 activation storage end to end.
    feats = [jnp.transpose(f, (0, 2, 3, 1)).astype(jnp.bfloat16)
             for f in features_nchw]
    l1, E1, l2, E2, l3, E3, l4 = feats

    s_l1 = (Y // 4, X // 4)
    s_l2 = (Y // 8, X // 8)
    s_l3 = (Y // 16, X // 16)
    s_l4 = (Y // 32, X // 32)
    s_E1 = (Y * 3 // 16, X * 3 // 16)
    s_E2 = (Y * 3 // 32, X * 3 // 32)
    s_E3 = (Y * 3 // 64, X * 3 // 64)

    cat = lambda *xs: jnp.concatenate(xs, axis=-1)

    # L stage (concat only materialized for the 3x3 path; bf16, fused with pad).
    l1 = conv_block(cat(l1, resize(E1, s_l1, "up")), params["L1"])
    l2 = conv_block(cat(resize(E1, s_l2, "pool"), l2, resize(E2, s_l2, "up")), params["L2"])
    l3 = conv_block(cat(resize(E2, s_l3, "pool"), l3, resize(E3, s_l3, "up")), params["L3"])
    l4 = conv_block(cat(resize(E3, s_l4, "pool"), l4), params["L4"])

    # E stage.
    E1 = conv_block(cat(resize(l1, s_E1, "pool"), E1, resize(l2, s_E1, "up")), params["E1"])
    E2 = conv_block(cat(resize(l2, s_E2, "pool"), E2, resize(l3, s_E2, "up")), params["E2"])
    E3 = conv_block(cat(resize(l3, s_E3, "pool"), E3, resize(l4, s_E3, "up")), params["E3"])

    # F stage: 1x1 convs over virtual concats (no materialized concat).
    f1 = conv1x1_cat([l1, resize(E1, s_l1, "up")], params["F1"])
    f2 = conv1x1_cat([resize(E1, s_l2, "pool"), l2, resize(E2, s_l2, "up")], params["F2"])
    f3 = conv1x1_cat([resize(E2, s_l3, "pool"), l3, resize(E3, s_l3, "up")], params["F3"])
    f4 = conv1x1_cat([resize(E3, s_l4, "pool"), l4], params["F4"])

    out = (f1, E1, f2, E2, f3, E3, f4)
    # Back to NCHW, f32 at the module boundary.
    return tuple(jnp.transpose(o, (0, 3, 1, 2)).astype(jnp.float32) for o in out)


# ----------------------------------------------------------------------------
if __name__ == "__main__":
    key = jax.random.PRNGKey(0)
    kparam, *kfeat = jax.random.split(key, 8)
    params = init_params(kparam)

    N, C = 2, INNER
    sizes = [(Y // 4, X // 4), (Y * 3 // 16, X * 3 // 16),
             (Y // 8, X // 8), (Y * 3 // 32, X * 3 // 32),
             (Y // 16, X // 16), (Y * 3 // 64, X * 3 // 64),
             (Y // 32, X // 32)]
    features = [jax.random.normal(k, (N, C, h, w), jnp.float32)
                for k, (h, w) in zip(kfeat, sizes)]

    out = fpn_layer_forward(features, params)
    out = jax.block_until_ready(out)

    assert len(out) == 7
    for o, (h, w) in zip(out, sizes):
        assert o.shape == (N, C, h, w), (o.shape, (N, C, h, w))
        assert bool(jnp.all(jnp.isfinite(o)))
    print("KERNEL_OK")
</pallas_src>

<mosaic_0001>
module attributes {stable_mosaic.version = 11 : i64} {
  func.func @_hpass_kernel(%arg0: i32, %arg1: i32, %arg2: memref<16x12xbf16, #tpu.memory_space<vmem>>, %arg3: memref<1x12x384xbf16, #tpu.memory_space<vmem>>, %arg4: memref<1x16x384xbf16, #tpu.memory_space<vmem>>) attributes {dimension_semantics = [#tpu.dimension_semantics<parallel>, #tpu.dimension_semantics<parallel>], iteration_bounds = array<i64: 2, 1>, scalar_prefetch = 0 : i64, scratch_operands = 0 : i64, tpu.core_type = #tpu.core_type<tc>, window_params = [{pipeline_mode = #tpu.pipeline_mode<synchronous>, transform_indices = @transform_0, window_bounds = array<i64: 16, 12>}, {transform_indices = @transform_1, window_bounds = array<i64: 1, 12, 384>}, {transform_indices = @transform_2, window_bounds = array<i64: 1, 16, 384>}]} {
    %c0 = arith.constant 0 : index
    %c0_0 = arith.constant 0 : index
    %0 = vector.load %arg2[%c0, %c0_0] : memref<16x12xbf16, #tpu.memory_space<vmem>>, vector<16x12xbf16>
    %c0_1 = arith.constant 0 : index
    %c0_2 = arith.constant 0 : index
    %c0_3 = arith.constant 0 : index
    %1 = vector.load %arg3[%c0_1, %c0_2, %c0_3] : memref<1x12x384xbf16, #tpu.memory_space<vmem>>, vector<1x12x384xbf16>
    %2 = vector.shape_cast %1 : vector<1x12x384xbf16> to vector<12x384xbf16>
    %cst = arith.constant dense<0.000000e+00> : vector<16x384xf32>
    %3 = tpu.matmul %0, %2, %cst {dimension_numbers = #tpu.dot_dimension_numbers<[1], [0], [0], [1], [0, 0, 1, 1], [], []>} : vector<16x12xbf16>, vector<12x384xbf16>, vector<16x384xf32> -> vector<16x384xf32>
    %4 = arith.truncf %3 : vector<16x384xf32> to vector<16x384xbf16>
    %c0_4 = arith.constant 0 : index
    %c0_5 = arith.constant 0 : index
    %c0_6 = arith.constant 0 : index
    %5 = vector.load %arg4[%c0_4, %c0_5, %c0_6] : memref<1x16x384xbf16, #tpu.memory_space<vmem>>, vector<1x16x384xbf16>
    %6 = vector.shape_cast %5 : vector<1x16x384xbf16> to vector<16x384xbf16>
    %7 = vector.shape_cast %4 : vector<16x384xbf16> to vector<1x16x384xbf16>
    tpu.vector_store %arg4[%c0_4, %c0_5, %c0_6], %7 {strides = array<i32>} : memref<1x16x384xbf16, #tpu.memory_space<vmem>>, vector<1x16x384xbf16>,
    return
  }
  func.func @transform_0(%arg0: i32, %arg1: i32) -> (i32, i32) {
    %c0_i32 = arith.constant 0 : i32
    %c0_i32_0 = arith.constant 0 : i32
    %c0_i32_1 = arith.constant 0 : i32
    return %c0_i32, %c0_i32_0 : i32, i32
  }
  func.func @transform_1(%arg0: i32, %arg1: i32) -> (i32, i32, i32) {
    %c0_i32 = arith.constant 0 : i32
    %c0_i32_0 = arith.constant 0 : i32
    return %arg0, %c0_i32, %arg1 : i32, i32, i32
  }
  func.func @transform_2(%arg0: i32, %arg1: i32) -> (i32, i32, i32) {
    %c0_i32 = arith.constant 0 : i32
    %c0_i32_0 = arith.constant 0 : i32
    return %arg0, %c0_i32, %arg1 : i32, i32, i32
  }
}

</mosaic_0001>

<bundles_post_ra>
// kernel: tpu_custom_call.1
= control target key start
LH: loop header
LB: loop body
LE: loop exit
PB: predicated region body
PF: predicated region fallthrough
CT: control target
= control target key end

     0   :  { %7 = vsyncpa [#allocation3], 0  ;;  %s734_s0 = inlined_call_operand.vmem [shape: bf16[16,12], index: 0, kind: input, shape index: {}]   ;;  %s735_s1 = inlined_call_operand.vmem [shape: bf16[2,12,384], index: 1, kind: input, shape index: {}]   ;;  %s736_s2 = inlined_call_operand.hbm [shape: bf16[2,16,384], index: 2, kind: output, shape index: {}]  }
   0x1   :  { %9 = vsyncpa [#allocation3 + $0x1], 0  ;;  %s616_s9 = smov 0   ;;  %s618_s10 = smov 0  }
   0x2   :  { %s620_s11 = smov 0   ;;  %s622_s12 = smov 0  }
   0x3   :  { %s624_s13 = smov 0   ;;  %s626_s14 = smov 0  }
   0x4 LB: > { %s415_s15 = sadd.s32 4294967295, %s593_s14   ;;  %s416_s16 = sadd.s32 4294967294, %s593_s14   ;;  %s593_s14 = sphi %s626_s14, %s15_s14   ;;  %s589_s13 = sphi %s624_s13, %s743_s13   ;;  %s585_s12 = sphi %s622_s12, %s742_s12   ;;  %s581_s11 = sphi %s620_s11, %s741_s11   ;;  %s577_s10 = sphi %s618_s10, %s740_s10   ;;  %s573_s9 = sphi %s616_s9, %s739_s9  }
   0x5   : > { %s27_s17 = sadd.s32 1, %s589_s13  ;;  %s85_s18 = sadd.s32 1, %s581_s11 }
   0x6   : > { %p29_p0 = scmp.ge.s32.totalorder %s27_s17, 2  ;;  %p95_p1 = scmp.ne.s32.totalorder %s581_s11, %s577_s10 }
   0x7   : > { %p96_p2 = scmp.eq.s32.totalorder %s415_s15, 1  ;;  %p101_p3 = scmp.ne.s32.totalorder %s577_s10, %s573_s9 }
   0x8   : > { %s745_s17 = smov (%p29_p0, %s27_s17), 0  ;;  %p102_p5 = scmp.eq.s32.totalorder %s416_s16, 1 }
   0x9   : > { %p656_p4 = por %p96_p2, %p95_p1  ;;  %s80_s20 = ssub.s32 %s589_s13, %s745_s17 }
   0xa   : > { %p419_p6 = scmp.ge.s32.totalorder %s593_s14, 1  ;;  %p83_p7 = scmp.eq.s32.totalorder %s80_s20, 0 }
   0xb   : > { %p663_p8 = por %p102_p5, %p101_p3  ;;  %p136_p9 = scmp.lt.s32.totalorder %s593_s14, 3 }
   0xc   : > { %s669_s22 = scalar_select %p83_p7, %s581_s11, %s85_s18  }
   0xd   : > { %p137_p10 = pnand %p419_p6, %p136_p9 }
   0xe   : > { %p163_p11 = scmp.lt.s32.totalorder (!%p137_p10), %s585_s12, 1  ;;  %v595_v0 = vmov (!%p137_p10), 0.0   ;;  %v596_v1 = vmov (!%p137_p10), 0   ;;  %vm597_vm0 = vmmov (!%p137_p10), 0   ;;  %vm202_vm1 = vcmask (!%p137_p10), 1045504   ;;  %v514_v6 = vld [vmem:[%s734_s0] sm:$0xff] (!%p137_p10)  }
   0xf   : > { %140 = sbr.rel (%p137_p10) target bundleno = 264 (0x108), region = 28  ;;  %441 = vmatprep.subr.bf16.mxu1 (!%p137_p10), %v595_v0  ;;  %244 = vmatprep.mubr.bf16.mxu0 (!%p137_p10), %v596_v1  ;;  %vm198_vm2 = vcmask (!%p137_p10), 97280   ;;  %s159_s30 = sand.u32 (!%p137_p10), 1, %s577_s10  }
  0x10   : > { %443 = vmatprep.mubr.msk.bf16.mxu1 (!%p137_p10), %vm597_vm0, %v595_v0  ;;  %s447_s3 = smul.u32 (!%p137_p10), 24, %s159_s30  ;;  %s688_s15 = scalar_lea.sflag (!%p137_p10), [#allocation3], %s159_s30 }
  0x11   : > { %s449_s6 = smul.u32 (!%p137_p10), 384, %s585_s12  ;;  %s598_s18 = smov (!%p137_p10), [#allocation2]  }
  0x12   : > { %s161_s4 = scalar_lea.vmem (!%p137_p10), [#allocation2], %s447_s3  ;;  %s519_s20 = sshll.u32 (!%p137_p10), %s598_s18, 4  ;;  %s520_s20 = int_to_ptr.vmem [resolvable:$false] %s519_s20 }
  0x13   : > { %s336_s5 = sshll.u32 (!%p137_p10), %s161_s4, 4  ;;  %s681_s5 = int_to_ptr.vmem [resolvable:$true] %s336_s5 }
  0x14   : > { %s515_s16 = scalar_lea.vmem (!%p137_p10), %s681_s5, 384  ;;  %p522_p1 = scmp.lt.s32.totalorder (!%p137_p10), %s681_s5, %s520_s20 }
  0x15   : > { %p516_p12 = scmp.ne.s32.totalorder (!%p137_p10), %s681_s5, %s515_s16 }
  0x16   : > { %s164_s23 = scalar_select %p163_p11, %s585_s12, 1 }
  0x17   : > { %s686_s12 = scalar_lea.hbm %s736_s2, %s449_s6  ;;  %p517_p13 = pnand %p516_p12, %p656_p4 }
  0x18   : > { %s448_s24 = smul.u32 24, %s164_s23  ;;  %s521_s23 = scalar_lea.vmem %s520_s20, 768 }
  0x19   : > { %p518_p0 = pneg %p517_p13  ;;  %p523_p2 = scmp.lt.s32.totalorder %s521_s23, %s515_s16 }
  0x1a   : > { %s170_s27 = scalar_lea.vmem %s735_s1, %s448_s24 }
  0x1b   : > { %v510_v2 = vld [vmem:[%s170_s27 + $0x4] ss:$12 sps:$4 sm:$0x3f]   ;;  %v512_v3 = vld [vmem:[%s170_s27] ss:$12 sps:$4 sm:$0x3f]   ;;  %p524_p3 = por %p523_p2, %p522_p1 }
  0x1c   : > { %425 = vmatprep.subr.msk.bf16.mxu0 %vm202_vm1, %v510_v2  ;;  %v513_v4 = vld [vmem:[%s170_s27 + $0x8] ss:$12 sps:$4 sm:$0x3f]   ;;  %v204_v5 = vsel %vm202_vm1, %v512_v3, 0 }
  0x1d   : > { %213 = vmatpush1.bf16.msra.mxu0 %v204_v5  ;;  %v210_v7 = vsel %vm202_vm1, %v513_v4, 0  ;;  %p525_p5 = pnand %p524_p3, %p518_p0 }
  0x1e   : > { %442 = vmatpush3.bf16.msra.mxu1 %v210_v7 }
  0x20   : > { %426 = vmatmul.mubr.msk.bf16.vlgmr.msra.gmra.mrb[0].mxu0 %vm198_vm2, %v514_v6 }
  0x21   : > { %444 = vmatmul.mubr.msk.bf16.vlgmr.msra.gmra.mrb[0].mxu1 %vm198_vm2, %v514_v6 }
  0xf3   : > { %v246_v8 = vpop.f32.mrb[0].mxu0 }
  0xf4   : > { %v289_v9 = vpop.f32.mrb[0].mxu1  ;;  %v248_v10 = vpop.f32.mrb[1].mxu0 }
  0xf5   : > { %v436_v11 = vpack.c.bf16 %v289_v9, %v289_v9  ;;  %v435_v12 = vpack.c.bf16 %v248_v10, %v246_v8  ;;  %v445_v13 = vpop.f32.mrb[1].mxu1  ;;  %v250_v14 = vpop.f32.mrb[2].mxu0 }
  0xf6   : > { %v292_v15 = vpop.f32.mrb[2].mxu1  ;;  %v252_v16 = vpop.f32.mrb[3].mxu0 }
  0xf7   : > { %317 = vst [vmem:[%s161_s4 + $0x8] sm:$0xf] %v436_v11  ;;  %316 = vst [vmem:[%s161_s4] sm:$0xff] %v435_v12  ;;  %v438_v17 = vpack.c.bf16 %v292_v15, %v292_v15  ;;  %v437_v18 = vpack.c.bf16 %v252_v16, %v250_v14  ;;  %v446_v19 = vpop.f32.mrb[3].mxu1 }
  0xf9   : > { %319 = vst [vmem:[%s161_s4 + $0x14] sm:$0xf] %v438_v17  ;;  %318 = vst [vmem:[%s161_s4 + $0xc] sm:$0xff] %v437_v18 }
  0xfa   : > { %528 = shalt.err (!%p525_p5)
}
  0xfb   : > { %s529_s24 = scalar_lea.hbm %s686_s12, 384  ;;  %s533_s27 = scalar_lea.hbm %s736_s2, 768 }
  0xfc   : > { %p530_p6 = scmp.ne.s32.totalorder %s686_s12, %s529_s24  ;;  %p534_p10 = scmp.lt.u32.totalorder %s686_s12, %s736_s2 }
  0xfd   : > { %p535_p11 = scmp.lt.u32.totalorder %s533_s27, %s529_s24  ;;  %p537_p13 = scmp.lt.u32.totalorder %s529_s24, %s686_s12 }
  0xfe   : > { %p531_p7 = pnand %p530_p6, %p656_p4 }
  0xff   : > { %p536_p12 = por %p535_p11, %p534_p10 }
 0x100   : > { %p532_p9 = pneg %p531_p7 }
 0x101   : > { %p538_p0 = por %p537_p13, %p536_p12 }
 0x103   : > { %p539_p1 = pnand %p538_p0, %p532_p9 }
 0x105   : > { %542 = shalt.err (!%p539_p1)
}
 0x106   : > { %s599_s30 = smov 192   ;;  %s600_s3 = smov 12  }
 0x107   : > { %450 = dma.vmem_to_hbm [thread:$0]  (%p656_p4), %s681_s5, 384, %s686_s12, %s688_s15, %s599_s30, %s599_s30, %s600_s3  }
 0x108 PF: > { %p456_p2 = scmp.ge.s32.totalorder %s593_s14, 2  ;;  %s351_s4 = sand.u32 1, %s573_s9  }
 0x109   : > { %s352_s6 = scalar_lea.sflag [#allocation3], %s351_s4 }
 0x10a   : > { %p453_p3 = pnand %p456_p2, %p663_p8 }
 0x10c   : > { %568 = dma.done.wait (!%p453_p3), %s352_s6, 384  }
 0x10d   : > { %570 = vsyncadd (!%p453_p3), %s352_s6, 4294966912  ;;  %s15_s14 = sadd.s32 1, %s593_s14   ;;  %s739_s9 = smov %s577_s10 }
 0x10e   : > { %p12_p5 = scmp.ge.s32.totalorder %s15_s14, 4   ;;  %s740_s10 = smov %s581_s11 }
 0x10f   : > { %s741_s11 = smov %s669_s22  ;;  %s742_s12 = smov %s589_s13 }
 0x110   : > { %s743_s13 = smov %s745_s17  ;;  %14 = sbr.rel (!%p12_p5) target bundleno = 4 (0x4), region = 63 }
 0x117   :  { %357 = vsyncpa [#allocation3], 1 }
 0x118   :  { %359 = vsyncpa [#allocation3 + $0x1], 1 }

</bundles_post_ra>
